<compile_context>
chip_gen: v7x
topology: tpu7x:2x2x1
jax: 0.10.0
libtpu: 0.0.40
codegen_flags: <defaults>
</compile_context>

<pallas_src>
import jax
import jax.numpy as jnp
from jax import lax
from jax.experimental import pallas as pl
from jax.experimental.pallas import tpu as pltpu  # noqa: F401 (TPU backend import)


# ----------------------------------------------------------------------------
# Pallas kernel: the full chain of SE (squeeze-excitation) attention blocks
# ----------------------------------------------------------------------------
def _fused_se_kernel(x_ref, w1_ref, b1_ref, w2_ref, b2_ref, o_ref):
    # x_ref : (N, C, HW)  io dtype        w1_ref: (nb, C, Cr) f32
    # b1_ref: (nb, 1, Cr) f32             w2_ref: (nb, Cr, C) f32
    # b2_ref: (nb, 1, C)  f32             o_ref : (N, C, HW)  io dtype
    nb = w1_ref.shape[0]
    inv_hw = 1.0 / x_ref.shape[-1]

    # Single HBM->VMEM load of x; all block math happens on the resident copy.
    x0 = x_ref[...].astype(jnp.float32)

    def body(i, x):
        # squeeze: global average pool over the spatial (lane) axis -> (N, C)
        pooled = jnp.sum(x, axis=-1) * inv_hw
        # excitation FC1 on the VPU/XLU (no MXU): (N, C) -> (N, Cr)
        h = jnp.sum(pooled[:, :, None] * w1_ref[i], axis=1) + b1_ref[i]
        h = jnp.maximum(h, 0.0)
        # excitation FC2 on the VPU/XLU: (N, Cr) -> (N, C)
        s = jnp.sum(h[:, :, None] * w2_ref[i], axis=1) + b2_ref[i]
        s = jax.nn.sigmoid(s)
        # scale: broadcast channel gates over the spatial (lane) axis
        return x * s[:, :, None]

    out = lax.fori_loop(0, nb, body, x0, unroll=True)
    o_ref[...] = out.astype(o_ref.dtype)


def fused_se_chain(x_flat, params, *, io_dtype=jnp.float32):
    """Apply all SE attention blocks in one pallas_call.

    x_flat: (N, C, HW)
    params: list of (w1 (C, Cr), b1 (Cr,), w2 (Cr, C), b2 (C,)) per block
    """
    n, c, hw = x_flat.shape
    cr = params[0][0].shape[1]

    # Stack weights once; each stack is a single one-shot DMA (no grid), so no
    # further packing into one lane-padded blob is needed.
    w1s = jnp.stack([p[0] for p in params]).astype(jnp.float32)                  # (nb, C, Cr)
    b1s = jnp.stack([p[1].reshape(1, cr) for p in params]).astype(jnp.float32)   # (nb, 1, Cr)
    w2s = jnp.stack([p[2] for p in params]).astype(jnp.float32)                  # (nb, Cr, C)
    b2s = jnp.stack([p[3].reshape(1, c) for p in params]).astype(jnp.float32)    # (nb, 1, C)

    # Grid-less call: every operand is a single whole-array VMEM block.
    return pl.pallas_call(
        _fused_se_kernel,
        out_shape=jax.ShapeDtypeStruct((n, c, hw), io_dtype),
    )(x_flat.astype(io_dtype), w1s, b1s, w2s, b2s)


# ----------------------------------------------------------------------------
# Module wrapper mirroring UnetCenterAttention.forward
# ----------------------------------------------------------------------------
def init_params(key, n_blocks, channels, reduction=4):
    """Deterministic SE weights for every decoder block (all blocks have C=channels)."""
    c, cr = channels, max(channels // reduction, 1)
    params = []
    for _ in range(n_blocks):
        k1, k2, key = jax.random.split(key, 3)
        w1 = jax.random.normal(k1, (c, cr), jnp.float32) * 0.1
        b1 = jnp.zeros((cr,), jnp.float32)
        w2 = jax.random.normal(k2, (cr, c), jnp.float32) * 0.1
        b2 = jnp.zeros((c,), jnp.float32)
        params.append((w1, b1, w2, b2))
    return params


def unet_center_attention_forward(features, params, *, io_dtype=jnp.float32):
    """features: list of NCHW tensors (encoder outputs); params: per-block SE weights."""
    features = features[1:]          # drop the stem/input-level feature
    features = features[::-1]        # deepest first
    head = features[0]
    skips = features[1:]             # noqa: F841 -- accepted but ignored (see TODO above)

    n, c, h, w = head.shape
    x = head.reshape(n, c, h * w)    # layout: (N, C, H*W) -- HW on the lane axis
    x = fused_se_chain(x, params, io_dtype=io_dtype)
    return x.reshape(n, c, h, w)


# ----------------------------------------------------------------------------
# Pure-JAX reference (for correctness check)
# ----------------------------------------------------------------------------
def _se_ref(x, w1, b1, w2, b2):
    pooled = x.mean(axis=(2, 3))                         # (N, C)
    hid = jax.nn.relu(pooled @ w1 + b1)                  # (N, Cr)
    gate = jax.nn.sigmoid(hid @ w2 + b2)                 # (N, C)
    return x * gate[:, :, None, None]


def _forward_ref(features, params):
    features = features[1:][::-1]
    x = features[0]
    for (w1, b1, w2, b2) in params:
        x = _se_ref(x, w1, b1, w2, b2)
    return x


if __name__ == "__main__":
    key = jax.random.PRNGKey(0)

    # Small, consistent shapes.  6 encoder features; channels chosen so every
    # SE block sees C=16; deepest (head) feature is (2, 16, 16, 16).
    N, C = 2, 16
    n_blocks = 5
    feat_shapes = [
        (N, 3, 32, 32),    # raw input-level feature (dropped by forward)
        (N, C, 32, 32),
        (N, C, 32, 32),
        (N, C, 16, 16),
        (N, C, 16, 16),
        (N, C, 16, 16),    # deepest -> head, spatial 16*16 = 256 lanes
    ]
    keys = jax.random.split(key, len(feat_shapes) + 1)
    features = [jax.random.normal(k, s, jnp.float32) for k, s in zip(keys[:-1], feat_shapes)]
    params = init_params(keys[-1], n_blocks, C, reduction=4)

    ref = _forward_ref(features, params)

    # f32 I/O: exact module numerics.
    out = jax.block_until_ready(unet_center_attention_forward(features, params))
    assert out.shape == ref.shape == (N, C, 16, 16)
    assert jnp.allclose(out, ref, atol=1e-5, rtol=1e-5), "f32 mismatch vs JAX reference"

    # bf16 I/O on x (HBM-bandwidth option); in-kernel math stays f32.
    out_bf16 = jax.block_until_ready(
        unet_center_attention_forward(features, params, io_dtype=jnp.bfloat16))
    assert jnp.allclose(out_bf16.astype(jnp.float32), ref, atol=1e-3, rtol=2e-2), \
        "bf16-io mismatch vs JAX reference"

    print("KERNEL_OK")
</pallas_src>

<mosaic_0001>
module attributes {stable_mosaic.version = 11 : i64} {
  func.func @_fused_se_kernel(%arg0: memref<2x16x256xf32, #tpu.memory_space<vmem>>, %arg1: memref<5x16x4xf32, #tpu.memory_space<vmem>>, %arg2: memref<5x1x4xf32, #tpu.memory_space<vmem>>, %arg3: memref<5x4x16xf32, #tpu.memory_space<vmem>>, %arg4: memref<5x1x16xf32, #tpu.memory_space<vmem>>, %arg5: memref<2x16x256xf32, #tpu.memory_space<vmem>>) attributes {dimension_semantics = [], scalar_prefetch = 0 : i64, scratch_operands = 0 : i64, tpu.core_type = #tpu.core_type<tc>} {
    %c0 = arith.constant 0 : index
    %c0_0 = arith.constant 0 : index
    %c0_1 = arith.constant 0 : index
    %0 = vector.load %arg0[%c0, %c0_0, %c0_1] : memref<2x16x256xf32, #tpu.memory_space<vmem>>, vector<2x16x256xf32>
    %c0_i32 = arith.constant 0 : i32
    %cst = arith.constant dense<0.000000e+00> : vector<2x16xf32>
    %1 = vector.multi_reduction <add>, %0, %cst [2] : vector<2x16x256xf32> to vector<2x16xf32>
    %cst_2 = arith.constant 3.906250e-03 : f32
    %2 = vector.broadcast %cst_2 : f32 to vector<2x16xf32>
    %3 = arith.mulf %1, %2 : vector<2x16xf32>
    %4 = vector.shape_cast %3 : vector<2x16xf32> to vector<2x16x1xf32>
    %5 = arith.index_cast %c0_i32 : i32 to index
    %c0_3 = arith.constant 0 : index
    %c0_4 = arith.constant 0 : index
    %6 = vector.load %arg1[%5, %c0_3, %c0_4] : memref<5x16x4xf32, #tpu.memory_space<vmem>>, vector<1x16x4xf32>
    %7 = vector.shape_cast %6 : vector<1x16x4xf32> to vector<16x4xf32>
    %8 = vector.shape_cast %7 : vector<16x4xf32> to vector<1x16x4xf32>
    %9 = vector.broadcast %4 : vector<2x16x1xf32> to vector<2x16x4xf32>
    %10 = vector.broadcast %8 : vector<1x16x4xf32> to vector<2x16x4xf32>
    %11 = arith.mulf %9, %10 : vector<2x16x4xf32>
    %cst_5 = arith.constant dense<0.000000e+00> : vector<2x4xf32>
    %12 = vector.multi_reduction <add>, %11, %cst_5 [1] : vector<2x16x4xf32> to vector<2x4xf32>
    %13 = arith.index_cast %c0_i32 : i32 to index
    %c0_6 = arith.constant 0 : index
    %c0_7 = arith.constant 0 : index
    %14 = vector.load %arg2[%13, %c0_6, %c0_7] : memref<5x1x4xf32, #tpu.memory_space<vmem>>, vector<1x1x4xf32>
    %15 = vector.shape_cast %14 : vector<1x1x4xf32> to vector<1x4xf32>
    %16 = vector.broadcast %15 : vector<1x4xf32> to vector<2x4xf32>
    %17 = arith.addf %12, %16 : vector<2x4xf32>
    %cst_8 = arith.constant 0.000000e+00 : f32
    %18 = vector.broadcast %cst_8 : f32 to vector<2x4xf32>
    %19 = arith.maximumf %17, %18 : vector<2x4xf32>
    %20 = vector.shape_cast %19 : vector<2x4xf32> to vector<2x4x1xf32>
    %21 = arith.index_cast %c0_i32 : i32 to index
    %c0_9 = arith.constant 0 : index
    %c0_10 = arith.constant 0 : index
    %22 = vector.load %arg3[%21, %c0_9, %c0_10] : memref<5x4x16xf32, #tpu.memory_space<vmem>>, vector<1x4x16xf32>
    %23 = vector.shape_cast %22 : vector<1x4x16xf32> to vector<4x16xf32>
    %24 = vector.shape_cast %23 : vector<4x16xf32> to vector<1x4x16xf32>
    %25 = vector.broadcast %20 : vector<2x4x1xf32> to vector<2x4x16xf32>
    %26 = vector.broadcast %24 : vector<1x4x16xf32> to vector<2x4x16xf32>
    %27 = arith.mulf %25, %26 : vector<2x4x16xf32>
    %cst_11 = arith.constant dense<0.000000e+00> : vector<2x16xf32>
    %28 = vector.multi_reduction <add>, %27, %cst_11 [1] : vector<2x4x16xf32> to vector<2x16xf32>
    %29 = arith.index_cast %c0_i32 : i32 to index
    %c0_12 = arith.constant 0 : index
    %c0_13 = arith.constant 0 : index
    %30 = vector.load %arg4[%29, %c0_12, %c0_13] : memref<5x1x16xf32, #tpu.memory_space<vmem>>, vector<1x1x16xf32>
    %31 = vector.shape_cast %30 : vector<1x1x16xf32> to vector<1x16xf32>
    %32 = vector.broadcast %31 : vector<1x16xf32> to vector<2x16xf32>
    %33 = arith.addf %28, %32 : vector<2x16xf32>
    %34 = arith.negf %33 : vector<2x16xf32>
    %35 = math.exp %34 : vector<2x16xf32>
    %cst_14 = arith.constant 1.000000e+00 : f32
    %36 = vector.broadcast %cst_14 : f32 to vector<2x16xf32>
    %37 = arith.addf %36, %35 : vector<2x16xf32>
    %38 = arith.divf %36, %37 : vector<2x16xf32>
    %39 = vector.shape_cast %38 : vector<2x16xf32> to vector<2x16x1xf32>
    %40 = vector.broadcast %39 : vector<2x16x1xf32> to vector<2x16x256xf32>
    %41 = arith.mulf %0, %40 : vector<2x16x256xf32>
    %c1_i32 = arith.constant 1 : i32
    %cst_15 = arith.constant dense<0.000000e+00> : vector<2x16xf32>
    %42 = vector.multi_reduction <add>, %41, %cst_15 [2] : vector<2x16x256xf32> to vector<2x16xf32>
    %cst_16 = arith.constant 3.906250e-03 : f32
    %43 = vector.broadcast %cst_16 : f32 to vector<2x16xf32>
    %44 = arith.mulf %42, %43 : vector<2x16xf32>
    %45 = vector.shape_cast %44 : vector<2x16xf32> to vector<2x16x1xf32>
    %46 = arith.index_cast %c1_i32 : i32 to index
    %c0_17 = arith.constant 0 : index
    %c0_18 = arith.constant 0 : index
    %47 = vector.load %arg1[%46, %c0_17, %c0_18] : memref<5x16x4xf32, #tpu.memory_space<vmem>>, vector<1x16x4xf32>
    %48 = vector.shape_cast %47 : vector<1x16x4xf32> to vector<16x4xf32>
    %49 = vector.shape_cast %48 : vector<16x4xf32> to vector<1x16x4xf32>
    %50 = vector.broadcast %45 : vector<2x16x1xf32> to vector<2x16x4xf32>
    %51 = vector.broadcast %49 : vector<1x16x4xf32> to vector<2x16x4xf32>
    %52 = arith.mulf %50, %51 : vector<2x16x4xf32>
    %cst_19 = arith.constant dense<0.000000e+00> : vector<2x4xf32>
    %53 = vector.multi_reduction <add>, %52, %cst_19 [1] : vector<2x16x4xf32> to vector<2x4xf32>
    %54 = arith.index_cast %c1_i32 : i32 to index
    %c0_20 = arith.constant 0 : index
    %c0_21 = arith.constant 0 : index
    %55 = vector.load %arg2[%54, %c0_20, %c0_21] : memref<5x1x4xf32, #tpu.memory_space<vmem>>, vector<1x1x4xf32>
    %56 = vector.shape_cast %55 : vector<1x1x4xf32> to vector<1x4xf32>
    %57 = vector.broadcast %56 : vector<1x4xf32> to vector<2x4xf32>
    %58 = arith.addf %53, %57 : vector<2x4xf32>
    %cst_22 = arith.constant 0.000000e+00 : f32
    %59 = vector.broadcast %cst_22 : f32 to vector<2x4xf32>
    %60 = arith.maximumf %58, %59 : vector<2x4xf32>
    %61 = vector.shape_cast %60 : vector<2x4xf32> to vector<2x4x1xf32>
    %62 = arith.index_cast %c1_i32 : i32 to index
    %c0_23 = arith.constant 0 : index
    %c0_24 = arith.constant 0 : index
    %63 = vector.load %arg3[%62, %c0_23, %c0_24] : memref<5x4x16xf32, #tpu.memory_space<vmem>>, vector<1x4x16xf32>
    %64 = vector.shape_cast %63 : vector<1x4x16xf32> to vector<4x16xf32>
    %65 = vector.shape_cast %64 : vector<4x16xf32> to vector<1x4x16xf32>
    %66 = vector.broadcast %61 : vector<2x4x1xf32> to vector<2x4x16xf32>
    %67 = vector.broadcast %65 : vector<1x4x16xf32> to vector<2x4x16xf32>
    %68 = arith.mulf %66, %67 : vector<2x4x16xf32>
    %cst_25 = arith.constant dense<0.000000e+00> : vector<2x16xf32>
    %69 = vector.multi_reduction <add>, %68, %cst_25 [1] : vector<2x4x16xf32> to vector<2x16xf32>
    %70 = arith.index_cast %c1_i32 : i32 to index
    %c0_26 = arith.constant 0 : index
    %c0_27 = arith.constant 0 : index
    %71 = vector.load %arg4[%70, %c0_26, %c0_27] : memref<5x1x16xf32, #tpu.memory_space<vmem>>, vector<1x1x16xf32>
    %72 = vector.shape_cast %71 : vector<1x1x16xf32> to vector<1x16xf32>
    %73 = vector.broadcast %72 : vector<1x16xf32> to vector<2x16xf32>
    %74 = arith.addf %69, %73 : vector<2x16xf32>
    %75 = arith.negf %74 : vector<2x16xf32>
    %76 = math.exp %75 : vector<2x16xf32>
    %cst_28 = arith.constant 1.000000e+00 : f32
    %77 = vector.broadcast %cst_28 : f32 to vector<2x16xf32>
    %78 = arith.addf %77, %76 : vector<2x16xf32>
    %79 = arith.divf %77, %78 : vector<2x16xf32>
    %80 = vector.shape_cast %79 : vector<2x16xf32> to vector<2x16x1xf32>
    %81 = vector.broadcast %80 : vector<2x16x1xf32> to vector<2x16x256xf32>
    %82 = arith.mulf %41, %81 : vector<2x16x256xf32>
    %c2_i32 = arith.constant 2 : i32
    %cst_29 = arith.constant dense<0.000000e+00> : vector<2x16xf32>
    %83 = vector.multi_reduction <add>, %82, %cst_29 [2] : vector<2x16x256xf32> to vector<2x16xf32>
    %cst_30 = arith.constant 3.906250e-03 : f32
    %84 = vector.broadcast %cst_30 : f32 to vector<2x16xf32>
    %85 = arith.mulf %83, %84 : vector<2x16xf32>
    %86 = vector.shape_cast %85 : vector<2x16xf32> to vector<2x16x1xf32>
    %87 = arith.index_cast %c2_i32 : i32 to index
    %c0_31 = arith.constant 0 : index
    %c0_32 = arith.constant 0 : index
    %88 = vector.load %arg1[%87, %c0_31, %c0_32] : memref<5x16x4xf32, #tpu.memory_space<vmem>>, vector<1x16x4xf32>
    %89 = vector.shape_cast %88 : vector<1x16x4xf32> to vector<16x4xf32>
    %90 = vector.shape_cast %89 : vector<16x4xf32> to vector<1x16x4xf32>
    %91 = vector.broadcast %86 : vector<2x16x1xf32> to vector<2x16x4xf32>
    %92 = vector.broadcast %90 : vector<1x16x4xf32> to vector<2x16x4xf32>
    %93 = arith.mulf %91, %92 : vector<2x16x4xf32>
    %cst_33 = arith.constant dense<0.000000e+00> : vector<2x4xf32>
    %94 = vector.multi_reduction <add>, %93, %cst_33 [1] : vector<2x16x4xf32> to vector<2x4xf32>
    %95 = arith.index_cast %c2_i32 : i32 to index
    %c0_34 = arith.constant 0 : index
    %c0_35 = arith.constant 0 : index
    %96 = vector.load %arg2[%95, %c0_34, %c0_35] : memref<5x1x4xf32, #tpu.memory_space<vmem>>, vector<1x1x4xf32>
    %97 = vector.shape_cast %96 : vector<1x1x4xf32> to vector<1x4xf32>
    %98 = vector.broadcast %97 : vector<1x4xf32> to vector<2x4xf32>
    %99 = arith.addf %94, %98 : vector<2x4xf32>
    %cst_36 = arith.constant 0.000000e+00 : f32
    %100 = vector.broadcast %cst_36 : f32 to vector<2x4xf32>
    %101 = arith.maximumf %99, %100 : vector<2x4xf32>
    %102 = vector.shape_cast %101 : vector<2x4xf32> to vector<2x4x1xf32>
    %103 = arith.index_cast %c2_i32 : i32 to index
    %c0_37 = arith.constant 0 : index
    %c0_38 = arith.constant 0 : index
    %104 = vector.load %arg3[%103, %c0_37, %c0_38] : memref<5x4x16xf32, #tpu.memory_space<vmem>>, vector<1x4x16xf32>
    %105 = vector.shape_cast %104 : vector<1x4x16xf32> to vector<4x16xf32>
    %106 = vector.shape_cast %105 : vector<4x16xf32> to vector<1x4x16xf32>
    %107 = vector.broadcast %102 : vector<2x4x1xf32> to vector<2x4x16xf32>
    %108 = vector.broadcast %106 : vector<1x4x16xf32> to vector<2x4x16xf32>
    %109 = arith.mulf %107, %108 : vector<2x4x16xf32>
    %cst_39 = arith.constant dense<0.000000e+00> : vector<2x16xf32>
    %110 = vector.multi_reduction <add>, %109, %cst_39 [1] : vector<2x4x16xf32> to vector<2x16xf32>
    %111 = arith.index_cast %c2_i32 : i32 to index
    %c0_40 = arith.constant 0 : index
    %c0_41 = arith.constant 0 : index
    %112 = vector.load %arg4[%111, %c0_40, %c0_41] : memref<5x1x16xf32, #tpu.memory_space<vmem>>, vector<1x1x16xf32>
    %113 = vector.shape_cast %112 : vector<1x1x16xf32> to vector<1x16xf32>
    %114 = vector.broadcast %113 : vector<1x16xf32> to vector<2x16xf32>
    %115 = arith.addf %110, %114 : vector<2x16xf32>
    %116 = arith.negf %115 : vector<2x16xf32>
    %117 = math.exp %116 : vector<2x16xf32>
    %cst_42 = arith.constant 1.000000e+00 : f32
    %118 = vector.broadcast %cst_42 : f32 to vector<2x16xf32>
    %119 = arith.addf %118, %117 : vector<2x16xf32>
    %120 = arith.divf %118, %119 : vector<2x16xf32>
    %121 = vector.shape_cast %120 : vector<2x16xf32> to vector<2x16x1xf32>
    %122 = vector.broadcast %121 : vector<2x16x1xf32> to vector<2x16x256xf32>
    %123 = arith.mulf %82, %122 : vector<2x16x256xf32>
    %c3_i32 = arith.constant 3 : i32
    %cst_43 = arith.constant dense<0.000000e+00> : vector<2x16xf32>
    %124 = vector.multi_reduction <add>, %123, %cst_43 [2] : vector<2x16x256xf32> to vector<2x16xf32>
    %cst_44 = arith.constant 3.906250e-03 : f32
    %125 = vector.broadcast %cst_44 : f32 to vector<2x16xf32>
    %126 = arith.mulf %124, %125 : vector<2x16xf32>
    %127 = vector.shape_cast %126 : vector<2x16xf32> to vector<2x16x1xf32>
    %128 = arith.index_cast %c3_i32 : i32 to index
    %c0_45 = arith.constant 0 : index
    %c0_46 = arith.constant 0 : index
    %129 = vector.load %arg1[%128, %c0_45, %c0_46] : memref<5x16x4xf32, #tpu.memory_space<vmem>>, vector<1x16x4xf32>
    %130 = vector.shape_cast %129 : vector<1x16x4xf32> to vector<16x4xf32>
    %131 = vector.shape_cast %130 : vector<16x4xf32> to vector<1x16x4xf32>
    %132 = vector.broadcast %127 : vector<2x16x1xf32> to vector<2x16x4xf32>
    %133 = vector.broadcast %131 : vector<1x16x4xf32> to vector<2x16x4xf32>
    %134 = arith.mulf %132, %133 : vector<2x16x4xf32>
    %cst_47 = arith.constant dense<0.000000e+00> : vector<2x4xf32>
    %135 = vector.multi_reduction <add>, %134, %cst_47 [1] : vector<2x16x4xf32> to vector<2x4xf32>
    %136 = arith.index_cast %c3_i32 : i32 to index
    %c0_48 = arith.constant 0 : index
    %c0_49 = arith.constant 0 : index
    %137 = vector.load %arg2[%136, %c0_48, %c0_49] : memref<5x1x4xf32, #tpu.memory_space<vmem>>, vector<1x1x4xf32>
    %138 = vector.shape_cast %137 : vector<1x1x4xf32> to vector<1x4xf32>
    %139 = vector.broadcast %138 : vector<1x4xf32> to vector<2x4xf32>
    %140 = arith.addf %135, %139 : vector<2x4xf32>
    %cst_50 = arith.constant 0.000000e+00 : f32
    %141 = vector.broadcast %cst_50 : f32 to vector<2x4xf32>
    %142 = arith.maximumf %140, %141 : vector<2x4xf32>
    %143 = vector.shape_cast %142 : vector<2x4xf32> to vector<2x4x1xf32>
    %144 = arith.index_cast %c3_i32 : i32 to index
    %c0_51 = arith.constant 0 : index
    %c0_52 = arith.constant 0 : index
    %145 = vector.load %arg3[%144, %c0_51, %c0_52] : memref<5x4x16xf32, #tpu.memory_space<vmem>>, vector<1x4x16xf32>
    %146 = vector.shape_cast %145 : vector<1x4x16xf32> to vector<4x16xf32>
    %147 = vector.shape_cast %146 : vector<4x16xf32> to vector<1x4x16xf32>
    %148 = vector.broadcast %143 : vector<2x4x1xf32> to vector<2x4x16xf32>
    %149 = vector.broadcast %147 : vector<1x4x16xf32> to vector<2x4x16xf32>
    %150 = arith.mulf %148, %149 : vector<2x4x16xf32>
    %cst_53 = arith.constant dense<0.000000e+00> : vector<2x16xf32>
    %151 = vector.multi_reduction <add>, %150, %cst_53 [1] : vector<2x4x16xf32> to vector<2x16xf32>
    %152 = arith.index_cast %c3_i32 : i32 to index
    %c0_54 = arith.constant 0 : index
    %c0_55 = arith.constant 0 : index
    %153 = vector.load %arg4[%152, %c0_54, %c0_55] : memref<5x1x16xf32, #tpu.memory_space<vmem>>, vector<1x1x16xf32>
    %154 = vector.shape_cast %153 : vector<1x1x16xf32> to vector<1x16xf32>
    %155 = vector.broadcast %154 : vector<1x16xf32> to vector<2x16xf32>
    %156 = arith.addf %151, %155 : vector<2x16xf32>
    %157 = arith.negf %156 : vector<2x16xf32>
    %158 = math.exp %157 : vector<2x16xf32>
    %cst_56 = arith.constant 1.000000e+00 : f32
    %159 = vector.broadcast %cst_56 : f32 to vector<2x16xf32>
    %160 = arith.addf %159, %158 : vector<2x16xf32>
    %161 = arith.divf %159, %160 : vector<2x16xf32>
    %162 = vector.shape_cast %161 : vector<2x16xf32> to vector<2x16x1xf32>
    %163 = vector.broadcast %162 : vector<2x16x1xf32> to vector<2x16x256xf32>
    %164 = arith.mulf %123, %163 : vector<2x16x256xf32>
    %c4_i32 = arith.constant 4 : i32
    %cst_57 = arith.constant dense<0.000000e+00> : vector<2x16xf32>
    %165 = vector.multi_reduction <add>, %164, %cst_57 [2] : vector<2x16x256xf32> to vector<2x16xf32>
    %cst_58 = arith.constant 3.906250e-03 : f32
    %166 = vector.broadcast %cst_58 : f32 to vector<2x16xf32>
    %167 = arith.mulf %165, %166 : vector<2x16xf32>
    %168 = vector.shape_cast %167 : vector<2x16xf32> to vector<2x16x1xf32>
    %169 = arith.index_cast %c4_i32 : i32 to index
    %c0_59 = arith.constant 0 : index
    %c0_60 = arith.constant 0 : index
    %170 = vector.load %arg1[%169, %c0_59, %c0_60] : memref<5x16x4xf32, #tpu.memory_space<vmem>>, vector<1x16x4xf32>
    %171 = vector.shape_cast %170 : vector<1x16x4xf32> to vector<16x4xf32>
    %172 = vector.shape_cast %171 : vector<16x4xf32> to vector<1x16x4xf32>
    %173 = vector.broadcast %168 : vector<2x16x1xf32> to vector<2x16x4xf32>
    %174 = vector.broadcast %172 : vector<1x16x4xf32> to vector<2x16x4xf32>
    %175 = arith.mulf %173, %174 : vector<2x16x4xf32>
    %cst_61 = arith.constant dense<0.000000e+00> : vector<2x4xf32>
    %176 = vector.multi_reduction <add>, %175, %cst_61 [1] : vector<2x16x4xf32> to vector<2x4xf32>
    %177 = arith.index_cast %c4_i32 : i32 to index
    %c0_62 = arith.constant 0 : index
    %c0_63 = arith.constant 0 : index
    %178 = vector.load %arg2[%177, %c0_62, %c0_63] : memref<5x1x4xf32, #tpu.memory_space<vmem>>, vector<1x1x4xf32>
    %179 = vector.shape_cast %178 : vector<1x1x4xf32> to vector<1x4xf32>
    %180 = vector.broadcast %179 : vector<1x4xf32> to vector<2x4xf32>
    %181 = arith.addf %176, %180 : vector<2x4xf32>
    %cst_64 = arith.constant 0.000000e+00 : f32
    %182 = vector.broadcast %cst_64 : f32 to vector<2x4xf32>
    %183 = arith.maximumf %181, %182 : vector<2x4xf32>
    %184 = vector.shape_cast %183 : vector<2x4xf32> to vector<2x4x1xf32>
    %185 = arith.index_cast %c4_i32 : i32 to index
    %c0_65 = arith.constant 0 : index
    %c0_66 = arith.constant 0 : index
    %186 = vector.load %arg3[%185, %c0_65, %c0_66] : memref<5x4x16xf32, #tpu.memory_space<vmem>>, vector<1x4x16xf32>
    %187 = vector.shape_cast %186 : vector<1x4x16xf32> to vector<4x16xf32>
    %188 = vector.shape_cast %187 : vector<4x16xf32> to vector<1x4x16xf32>
    %189 = vector.broadcast %184 : vector<2x4x1xf32> to vector<2x4x16xf32>
    %190 = vector.broadcast %188 : vector<1x4x16xf32> to vector<2x4x16xf32>
    %191 = arith.mulf %189, %190 : vector<2x4x16xf32>
    %cst_67 = arith.constant dense<0.000000e+00> : vector<2x16xf32>
    %192 = vector.multi_reduction <add>, %191, %cst_67 [1] : vector<2x4x16xf32> to vector<2x16xf32>
    %193 = arith.index_cast %c4_i32 : i32 to index
    %c0_68 = arith.constant 0 : index
    %c0_69 = arith.constant 0 : index
    %194 = vector.load %arg4[%193, %c0_68, %c0_69] : memref<5x1x16xf32, #tpu.memory_space<vmem>>, vector<1x1x16xf32>
    %195 = vector.shape_cast %194 : vector<1x1x16xf32> to vector<1x16xf32>
    %196 = vector.broadcast %195 : vector<1x16xf32> to vector<2x16xf32>
    %197 = arith.addf %192, %196 : vector<2x16xf32>
    %198 = arith.negf %197 : vector<2x16xf32>
    %199 = math.exp %198 : vector<2x16xf32>
    %cst_70 = arith.constant 1.000000e+00 : f32
    %200 = vector.broadcast %cst_70 : f32 to vector<2x16xf32>
    %201 = arith.addf %200, %199 : vector<2x16xf32>
    %202 = arith.divf %200, %201 : vector<2x16xf32>
    %203 = vector.shape_cast %202 : vector<2x16xf32> to vector<2x16x1xf32>
    %204 = vector.broadcast %203 : vector<2x16x1xf32> to vector<2x16x256xf32>
    %205 = arith.mulf %164, %204 : vector<2x16x256xf32>
    %c5_i32 = arith.constant 5 : i32
    %c0_71 = arith.constant 0 : index
    %c0_72 = arith.constant 0 : index
    %c0_73 = arith.constant 0 : index
    %206 = vector.load %arg5[%c0_71, %c0_72, %c0_73] : memref<2x16x256xf32, #tpu.memory_space<vmem>>, vector<2x16x256xf32>
    tpu.vector_store %arg5[%c0_71, %c0_72, %c0_73], %205 {strides = array<i32>} : memref<2x16x256xf32, #tpu.memory_space<vmem>>, vector<2x16x256xf32>,
    return
  }
}

</mosaic_0001>

<bundles_post_ra>
// kernel: tpu_custom_call.1
= control target key start
LH: loop header
LB: loop body
LE: loop exit
PB: predicated region body
PF: predicated region fallthrough
CT: control target
= control target key end

     0   :  { %s1199_s0 = inlined_call_operand.vmem [shape: f32[2,16,256], index: 0, kind: input, shape index: {}]   ;;  %s1200_s1 = inlined_call_operand.vmem [shape: f32[5,16,4], index: 1, kind: input, shape index: {}]   ;;  %s1201_s2 = inlined_call_operand.vmem [shape: f32[5,1,4], index: 2, kind: input, shape index: {}]   ;;  %s1202_s3 = inlined_call_operand.vmem [shape: f32[5,4,16], index: 3, kind: input, shape index: {}]   ;;  %s1203_s4 = inlined_call_operand.vmem [shape: f32[5,1,16], index: 4, kind: input, shape index: {}]   ;;  %s1204_s5 = inlined_call_operand.hbm [shape: f32[2,16,256], index: 5, kind: output, shape index: {}]  }
   0x1   :  { %v879_v0 = vld [vmem:[%s1199_s0 + $0x20] sm:$0xff]  ;;  %v884_v1 = vld [vmem:[%s1199_s0 + $0x28] sm:$0xff]  ;;  %v901_v5 = vld [vmem:[%s1199_s0 + $0x30] sm:$0xff] }
   0x2   :  { %v889_v2 = vld [vmem:[%s1199_s0] sm:$0xff]  ;;  %v35_v3 = vadd.f32 %v884_v1, %v879_v0  ;;  %v896_v4 = vld [vmem:[%s1199_s0 + $0x8] sm:$0xff]  ;;  %v906_v6 = vld [vmem:[%s1199_s0 + $0x38] sm:$0xff] }
   0x3   :  { %v29_v7 = vadd.f32 %v896_v4, %v889_v2  ;;  %v913_v8 = vld [vmem:[%s1199_s0 + $0x10] sm:$0xff]  ;;  %v918_v9 = vld [vmem:[%s1199_s0 + $0x18] sm:$0xff]  ;;  %v38_v10 = vadd.f32 %v906_v6, %v901_v5 }
   0x4   :  { %36 = vadd.xlane.f32.xlu1 %v35_v3 }
   0x5   :  { %10 = vsyncpa [#allocation3], 0  ;;  %30 = vadd.xlane.f32.xlu0 %v29_v7  ;;  %v32_v11 = vadd.f32 %v918_v9, %v913_v8  ;;  %v45_v15 = vld [vmem:[%s1200_s1] sm:$0xff]  ;;  %v46_v18 = vld [vmem:[%s1200_s1 + $0x8] sm:$0xff]  ;;  %vm51_vm0 = vcmask 31744   ;;  %v81_v37 = vlaneseq  ;;  %vm98_vm1 = vcmask 125952  }
   0x6   :  { %v736_v43 = vld [vmem:[%s1201_s2] ss:$0 sm:$0xff] }
   0x7   :  { %v82_v42 = vshrl.u32 %v81_v37, 7  ;;  %v95_v54 = vld [vmem:[%s1202_s3] sm:$0xf] }
   0x8   :  { %39 = vadd.xlane.f32.xlu1 %v38_v10 }
   0x9   :  { %33 = vadd.xlane.f32.xlu0 %v32_v11  ;;  %v937_v48 = vsub.s32 0, %v82_v42  ;;  %v740_v42 = vld [vmem:[%s1200_s1 + $0x10] sm:$0xff] }
  0x91   :  { %v37_v12 = vpop.xlane.xlu1 %36 }
  0x92   :  { %v43_v13 = vmul.f32 0.00390625, %v37_v12  ;;  %v31_v14 = vpop.xlane.xlu0 %30 }
  0x93   :  { %v41_v16 = vmul.f32 0.00390625, %v31_v14  ;;  %v737_v14 = vld [vmem:[%s1203_s4] ss:$0 sm:$0xff] }
  0x94   :  { %v49_v17 = vmul.f32 %v45_v15, %v43_v13 }
  0x95   :  { %v40_v19 = vpop.xlane.xlu1 %39  ;;  %v47_v22 = vmul.f32 %v45_v15, %v41_v16 }
  0x96   :  { %v44_v20 = vmul.f32 0.00390625, %v40_v19  ;;  %v34_v21 = vpop.xlane.xlu0 %33  ;;  %v61_v24 = vsel %vm51_vm0, %v49_v17, 0.0 }
  0x97   :  { %v42_v23 = vmul.f32 0.00390625, %v34_v21  ;;  %v52_v28 = vsel %vm51_vm0, %v47_v22, 0.0 }
  0x98   :  { %v50_v25 = vmul.f32 %v46_v18, %v44_v20 }
  0x99   :  { %v48_v26 = vmul.f32 %v46_v18, %v42_v23 }
  0x9a   :  { %v62_v27 = vsel %vm51_vm0, %v50_v25, 0.0 }
  0x9b   :  { %v63_v29 = vadd.f32 %v62_v27, %v61_v24  ;;  %v53_v30 = vsel %vm51_vm0, %v48_v26, 0.0 }
  0x9c   :  { %v54_v31 = vadd.f32 %v53_v30, %v52_v28 }
  0x9d   :  { %v64_v32 = vrot.slane %v63_v29, 4 }
  0x9e   :  { %v55_v33 = vrot.slane %v54_v31, 4 }
  0x9f   :  { %v65_v34 = vadd.f32 %v64_v32, %v63_v29 }
  0xa0   :  { %v56_v35 = vadd.f32 %v55_v33, %v54_v31 }
  0xa1   :  { %v66_v36 = vrot.slane %v65_v34, 2 }
  0xa2   :  { %v57_v38 = vrot.slane %v56_v35, 2 }
  0xa3   :  { %v67_v39 = vadd.f32 %v66_v36, %v65_v34 }
  0xa4   :  { %v58_v40 = vadd.f32 %v57_v38, %v56_v35 }
  0xa5   :  { %v68_v41 = vrot.slane %v67_v39, 1 }
  0xa6   :  { %v59_v44 = vrot.slane %v58_v40, 1 }
  0xa7   :  { %v69_v45 = vadd.f32 %v68_v41, %v67_v39 }
  0xa8   :  { %v60_v46 = vadd.f32 %v59_v44, %v58_v40 }
  0xa9   :  { %v78_v47 = vadd.f32 %v736_v43, %v69_v45 }
  0xaa   :  { %v77_v49 = vadd.f32 %v736_v43, %v60_v46 }
  0xab   :  { %v80_v50 = vmax.f32 %v78_v47, 0.0 }
  0xac   :  { %v79_v51 = vmax.f32 %v77_v49, 0.0 }
  0xad   :  { %v91_v52 = vrot.slane %v80_v50, %v937_v48 }
  0xae   :  { %v84_v53 = vrot.slane %v79_v51, %v937_v48 }
  0xaf   :  { %93 = vbcast.lane.b32.xlu1 %v91_v52, 256 }
  0xb0   :  { %86 = vbcast.lane.b32.xlu0 %v84_v53, 256 }
 0x121   :  { %v94_v55 = vpop.permute.xlu1 %93 }
 0x122   :  { %v97_v56 = vmul.f32 %v95_v54, %v94_v55  ;;  %v87_v57 = vpop.permute.xlu0 %86 }
 0x123   :  { %v96_v58 = vmul.f32 %v95_v54, %v87_v57 }
 0x124   :  { %v106_v59 = vsel %vm98_vm1, %v97_v56, 0.0 }
 0x125   :  { %v107_v60 = vrot.slane %v106_v59, 4  ;;  %v99_v61 = vsel %vm98_vm1, %v96_v58, 0.0 }
 0x126   :  { %v100_v62 = vrot.slane %v99_v61, 4 }
 0x127   :  { %v108_v63 = vadd.f32 %v107_v60, %v106_v59 }
 0x128   :  { %v101_v3 = vadd.f32 %v100_v62, %v99_v61 }
 0x129   :  { %v109_v7 = vrot.slane %v108_v63, 2 }
 0x12a   :  { %v102_v10 = vrot.slane %v101_v3, 2 }
 0x12b   :  { %v110_v11 = vadd.f32 %v109_v7, %v108_v63 }
 0x12c   :  { %v103_v12 = vadd.f32 %v102_v10, %v101_v3 }
 0x12d   :  { %v111_v13 = vrot.slane %v110_v11, 1 }
 0x12e   :  { %v104_v15 = vrot.slane %v103_v12, 1 }
 0x12f   :  { %v112_v16 = vadd.f32 %v111_v13, %v110_v11  ;;  %v743_v11 = vld [vmem:[%s1201_s2 + $0x1] ss:$0 sm:$0xff] }
 0x130   :  { %v105_v17 = vadd.f32 %v104_v15, %v103_v12 }
 0x131   :  { %v121_v18 = vadd.f32 %v737_v14, %v112_v16 }
 0x132   :  { %v120_v19 = vadd.f32 %v737_v14, %v105_v17 }
 0x133   :  { %v739_v20 = vmul.f32 -1.442695, %v121_v18 }
 0x134   :  { %v738_v21 = vmul.f32 -1.442695, %v120_v19 }
 0x135   :  { %779 = vpow2.f32 %v739_v20 }
 0x136   :  { %781 = vpow2.f32 %v738_v21 }
 0x13f   :  { %v780_v22 = vpop.eup %779 }
 0x140   :  { %v782_v23 = vpop.eup %781  ;;  %v129_v24 = vadd.f32 1.0, %v780_v22  ;;  %v744_v22 = vld [vmem:[%s1202_s3 + $0x4] sm:$0xf] }
 0x141   :  { %v128_v25 = vadd.f32 1.0, %v782_v23 }
 0x142   :  { %783 = vrcp.f32 %v129_v24 }
 0x143   :  { %785 = vrcp.f32 %v128_v25 }
 0x14c   :  { %v784_v26 = vpop.eup %783 }
 0x14d   :  { %v786_v27 = vpop.eup %785  ;;  %v148_v28 = vrot.slane %v784_v26, %v937_v48 }
 0x14e   :  { %v137_v29 = vrot.slane %v786_v27, %v937_v48 }
 0x14f   :  { %150 = vbcast.lane.b32.xlu0 %v148_v28, 256 }
 0x150   :  { %139 = vbcast.lane.b32.xlu1 %v137_v29, 256 }
 0x154   :  { %143 = vbcast.lane.b32.xlu1 %v137_v29, 264 }
 0x158   :  { %154 = vbcast.lane.b32.xlu1 %v148_v28, 264 }
 0x1c1   :  { %v151_v31 = vpop.permute.xlu0 %150 }
 0x1c2   :  { %v140_v30 = vpop.permute.xlu1 %139  ;;  %v958_v34 = vmul.f32 %v151_v31, %v879_v0  ;;  %v961_v35 = vmul.f32 %v151_v31, %v884_v1 }
 0x1c3   :  { %v952_v32 = vmul.f32 %v140_v30, %v889_v2  ;;  %v955_v33 = vmul.f32 %v140_v30, %v896_v4 }
 0x1c4   :  { %v170_v0 = vadd.f32 %v961_v35, %v958_v34 }
 0x1c5   :  { %v164_v36 = vadd.f32 %v955_v33, %v952_v32 }
 0x1c6   :  { %v144_v37 = vpop.permute.xlu1 %143 }
 0x1c7   :  { %v966_v38 = vmul.f32 %v144_v37, %v913_v8  ;;  %v969_v39 = vmul.f32 %v144_v37, %v918_v9  ;;  %165 = vadd.xlane.f32.xlu0 %v164_v36 }
 0x1c9   :  { %v167_v2 = vadd.f32 %v969_v39, %v966_v38 }
 0x1ca   :  { %v155_v4 = vpop.permute.xlu1 %154 }
 0x1cb   :  { %v976_v1 = vmul.f32 %v155_v4, %v901_v5  ;;  %v979_v40 = vmul.f32 %v155_v4, %v906_v6  ;;  %168 = vadd.xlane.f32.xlu1 %v167_v2  ;;  %171 = vadd.xlane.f32.xlu0 %v170_v0  ;;  %v741_v5 = vld [vmem:[%s1200_s1 + $0x18] sm:$0xff] }
 0x1cd   :  { %v173_v8 = vadd.f32 %v979_v40, %v976_v1 }
 0x1cf   :  { %174 = vadd.xlane.f32.xlu0 %v173_v8  ;;  %v746_v8 = vld [vmem:[%s1203_s4 + $0x1] ss:$0 sm:$0xff] }
 0x254   :  { %v166_v9 = vpop.xlane.xlu0 %165 }
 0x255   :  { %v176_v41 = vmul.f32 0.00390625, %v166_v9 }
 0x257   :  { %v183_v6 = vmul.f32 %v740_v42, %v176_v41 }
 0x258   :  { %v169_v43 = vpop.xlane.xlu1 %168  ;;  %v172_v44 = vpop.xlane.xlu0 %171 }
 0x259   :  { %v177_v45 = vmul.f32 0.00390625, %v169_v43  ;;  %v178_v46 = vmul.f32 0.00390625, %v172_v44  ;;  %v187_v50 = vsel %vm51_vm0, %v183_v6, 0.0 }
 0x25b   :  { %v184_v47 = vmul.f32 %v741_v5, %v177_v45  ;;  %v185_v52 = vmul.f32 %v740_v42, %v178_v46 }
 0x25c   :  { %v175_v49 = vpop.xlane.xlu0 %174 }
 0x25d   :  { %v188_v51 = vsel %vm51_vm0, %v184_v47, 0.0  ;;  %v179_v53 = vmul.f32 0.00390625, %v175_v49  ;;  %v196_v57 = vsel %vm51_vm0, %v185_v52, 0.0 }
 0x25e   :  { %v189_v54 = vadd.f32 %v188_v51, %v187_v50 }
 0x25f   :  { %v186_v55 = vmul.f32 %v741_v5, %v179_v53 }
 0x260   :  { %v190_v56 = vrot.slane %v189_v54, 4 }
 0x261   :  { %v197_v58 = vsel %vm51_vm0, %v186_v55, 0.0 }
 0x262   :  { %v191_v59 = vadd.f32 %v190_v56, %v189_v54  ;;  %v198_v60 = vadd.f32 %v197_v58, %v196_v57 }
 0x264   :  { %v192_v61 = vrot.slane %v191_v59, 2  ;;  %v199_v62 = vrot.slane %v198_v60, 4 }
 0x266   :  { %v200_v63 = vadd.f32 %v199_v62, %v198_v60  ;;  %v193_v3 = vadd.f32 %v192_v61, %v191_v59 }
 0x268   :  { %v201_v7 = vrot.slane %v200_v63, 2  ;;  %v194_v10 = vrot.slane %v193_v3, 1 }
 0x26a   :  { %v195_v12 = vadd.f32 %v194_v10, %v193_v3  ;;  %v202_v13 = vadd.f32 %v201_v7, %v200_v63 }
 0x26c   :  { %v213_v14 = vadd.f32 %v743_v11, %v195_v12  ;;  %v203_v15 = vrot.slane %v202_v13, 1 }
 0x26e   :  { %v215_v16 = vmax.f32 %v213_v14, 0.0  ;;  %v204_v17 = vadd.f32 %v203_v15, %v202_v13 }
 0x270   :  { %v220_v18 = vrot.slane %v215_v16, %v937_v48  ;;  %v214_v19 = vadd.f32 %v743_v11, %v204_v17  ;;  %v749_v11 = vld [vmem:[%s1200_s1 + $0x20] sm:$0xff] }
 0x272   :  { %222 = vbcast.lane.b32.xlu0 %v220_v18, 256  ;;  %v216_v20 = vmax.f32 %v214_v19, 0.0 }
 0x274   :  { %v227_v21 = vrot.slane %v216_v20, %v937_v48 }
 0x276   :  { %229 = vbcast.lane.b32.xlu1 %v227_v21, 256 }
 0x2e4   :  { %v223_v23 = vpop.permute.xlu0 %222 }
 0x2e5   :  { %v233_v24 = vmul.f32 %v744_v22, %v223_v23 }
 0x2e7   :  { %v235_v25 = vsel %vm98_vm1, %v233_v24, 0.0 }
 0x2e8   :  { %v236_v26 = vrot.slane %v235_v25, 4  ;;  %v230_v27 = vpop.permute.xlu1 %229 }
 0x2e9   :  { %v234_v28 = vmul.f32 %v744_v22, %v230_v27 }
 0x2ea   :  { %v237_v29 = vadd.f32 %v236_v26, %v235_v25 }
 0x2eb   :  { %v242_v30 = vsel %vm98_vm1, %v234_v28, 0.0 }
 0x2ec   :  { %v238_v31 = vrot.slane %v237_v29, 2  ;;  %v243_v36 = vrot.slane %v242_v30, 4 }
 0x2ee   :  { %v239_v37 = vadd.f32 %v238_v31, %v237_v29  ;;  %v244_v2 = vadd.f32 %v243_v36, %v242_v30 }
 0x2f0   :  { %v240_v0 = vrot.slane %v239_v37, 1  ;;  %v245_v4 = vrot.slane %v244_v2, 2 }
 0x2f2   :  { %v241_v9 = vadd.f32 %v240_v0, %v239_v37  ;;  %v246_v41 = vadd.f32 %v245_v4, %v244_v2  ;;  %v752_v0 = vld [vmem:[%s1201_s2 + $0x2] ss:$0 sm:$0xff] }
 0x2f4   :  { %v257_v42 = vadd.f32 %v746_v8, %v241_v9  ;;  %v247_v5 = vrot.slane %v246_v41, 1 }
 0x2f6   :  { %v747_v43 = vmul.f32 -1.442695, %v257_v42  ;;  %v248_v44 = vadd.f32 %v247_v5, %v246_v41 }
 0x2f8   :  { %787 = vpow2.f32 %v747_v43  ;;  %v258_v6 = vadd.f32 %v746_v8, %v248_v44 }
 0x2fa   :  { %v748_v45 = vmul.f32 -1.442695, %v258_v6 }
 0x2fc   :  { %789 = vpow2.f32 %v748_v45 }
 0x302   :  { %v788_v46 = vpop.eup %787 }
 0x303   :  { %v265_v47 = vadd.f32 1.0, %v788_v46  ;;  %v753_v46 = vld [vmem:[%s1202_s3 + $0x8] sm:$0xf] }
 0x305   :  { %791 = vrcp.f32 %v265_v47 }
 0x306   :  { %v790_v49 = vpop.eup %789 }
 0x307   :  { %v266_v50 = vadd.f32 1.0, %v790_v49 }
 0x309   :  { %793 = vrcp.f32 %v266_v50 }
 0x30f   :  { %v792_v51 = vpop.eup %791 }
 0x310   :  { %v274_v52 = vrot.slane %v792_v51, %v937_v48 }
 0x312   :  { %276 = vbcast.lane.b32.xlu1 %v274_v52, 256 }
 0x313   :  { %v794_v53 = vpop.eup %793 }
 0x314   :  { %v285_v54 = vrot.slane %v794_v53, %v937_v48 }
 0x316   :  { %287 = vbcast.lane.b32.xlu0 %v285_v54, 256  ;;  %280 = vbcast.lane.b32.xlu1 %v274_v52, 264 }
 0x31a   :  { %291 = vbcast.lane.b32.xlu1 %v285_v54, 264 }
 0x384   :  { %v277_v55 = vpop.permute.xlu1 %276 }
 0x385   :  { %v1009_v56 = vmul.f32 %v277_v55, %v952_v32  ;;  %v1012_v57 = vmul.f32 %v277_v55, %v955_v33 }
 0x387   :  { %v301_v58 = vadd.f32 %v1012_v57, %v1009_v56 }
 0x388   :  { %v281_v59 = vpop.permute.xlu1 %280  ;;  %v288_v60 = vpop.permute.xlu0 %287 }
 0x389   :  { %v1017_v61 = vmul.f32 %v281_v59, %v966_v38  ;;  %v1020_v62 = vmul.f32 %v281_v59, %v969_v39  ;;  %v1023_v63 = vmul.f32 %v288_v60, %v958_v34  ;;  %v1026_v32 = vmul.f32 %v288_v60, %v961_v35  ;;  %302 = vadd.xlane.f32.xlu0 %v301_v58 }
 0x38b   :  { %v304_v33 = vadd.f32 %v1020_v62, %v1017_v61  ;;  %v307_v3 = vadd.f32 %v1026_v32, %v1023_v63 }
 0x38c   :  { %v292_v7 = vpop.permute.xlu1 %291 }
 0x38d   :  { %v1033_v38 = vmul.f32 %v292_v7, %v976_v1  ;;  %v1036_v39 = vmul.f32 %v292_v7, %v979_v40  ;;  %305 = vadd.xlane.f32.xlu1 %v304_v33  ;;  %308 = vadd.xlane.f32.xlu0 %v307_v3  ;;  %v750_v1 = vld [vmem:[%s1200_s1 + $0x28] sm:$0xff] }
 0x38f   :  { %v310_v34 = vadd.f32 %v1036_v39, %v1033_v38 }
 0x391   :  { %311 = vadd.xlane.f32.xlu0 %v310_v34  ;;  %v755_v34 = vld [vmem:[%s1203_s4 + $0x2] ss:$0 sm:$0xff] }
 0x416   :  { %v303_v35 = vpop.xlane.xlu0 %302 }
 0x417   :  { %v313_v10 = vmul.f32 0.00390625, %v303_v35 }
 0x419   :  { %v320_v40 = vmul.f32 %v749_v11, %v313_v10 }
 0x41a   :  { %v306_v12 = vpop.xlane.xlu1 %305  ;;  %v309_v13 = vpop.xlane.xlu0 %308 }
 0x41b   :  { %v314_v14 = vmul.f32 0.00390625, %v306_v12  ;;  %v315_v15 = vmul.f32 0.00390625, %v309_v13  ;;  %v324_v18 = vsel %vm51_vm0, %v320_v40, 0.0 }
 0x41d   :  { %v321_v16 = vmul.f32 %v750_v1, %v314_v14  ;;  %v322_v20 = vmul.f32 %v749_v11, %v315_v15 }
 0x41e   :  { %v312_v17 = vpop.xlane.xlu0 %311 }
 0x41f   :  { %v325_v19 = vsel %vm51_vm0, %v321_v16, 0.0  ;;  %v316_v21 = vmul.f32 0.00390625, %v312_v17  ;;  %v333_v25 = vsel %vm51_vm0, %v322_v20, 0.0 }
 0x420   :  { %v326_v22 = vadd.f32 %v325_v19, %v324_v18 }
 0x421   :  { %v323_v23 = vmul.f32 %v750_v1, %v316_v21 }
 0x422   :  { %v327_v24 = vrot.slane %v326_v22, 4 }
 0x423   :  { %v334_v26 = vsel %vm51_vm0, %v323_v23, 0.0 }
 0x424   :  { %v328_v27 = vadd.f32 %v327_v24, %v326_v22  ;;  %v335_v28 = vadd.f32 %v334_v26, %v333_v25 }
 0x426   :  { %v329_v29 = vrot.slane %v328_v27, 2  ;;  %v336_v30 = vrot.slane %v335_v28, 4 }
 0x428   :  { %v337_v31 = vadd.f32 %v336_v30, %v335_v28  ;;  %v330_v36 = vadd.f32 %v329_v29, %v328_v27 }
 0x42a   :  { %v338_v37 = vrot.slane %v337_v31, 2  ;;  %v331_v2 = vrot.slane %v330_v36, 1 }
 0x42c   :  { %v332_v4 = vadd.f32 %v331_v2, %v330_v36  ;;  %v339_v8 = vadd.f32 %v338_v37, %v337_v31 }
 0x42e   :  { %v350_v9 = vadd.f32 %v752_v0, %v332_v4  ;;  %v340_v41 = vrot.slane %v339_v8, 1 }
 0x430   :  { %v352_v42 = vmax.f32 %v350_v9, 0.0  ;;  %v341_v5 = vadd.f32 %v340_v41, %v339_v8 }
 0x432   :  { %v357_v43 = vrot.slane %v352_v42, %v937_v48  ;;  %v351_v44 = vadd.f32 %v752_v0, %v341_v5  ;;  %v758_v0 = vld [vmem:[%s1200_s1 + $0x30] sm:$0xff] }
 0x434   :  { %359 = vbcast.lane.b32.xlu0 %v357_v43, 256  ;;  %v353_v6 = vmax.f32 %v351_v44, 0.0 }
 0x436   :  { %v364_v45 = vrot.slane %v353_v6, %v937_v48 }
 0x438   :  { %366 = vbcast.lane.b32.xlu1 %v364_v45, 256 }
 0x4a6   :  { %v360_v47 = vpop.permute.xlu0 %359 }
 0x4a7   :  { %v370_v49 = vmul.f32 %v753_v46, %v360_v47 }
 0x4a9   :  { %v372_v50 = vsel %vm98_vm1, %v370_v49, 0.0 }
 0x4aa   :  { %v373_v51 = vrot.slane %v372_v50, 4  ;;  %v367_v52 = vpop.permute.xlu1 %366 }
 0x4ab   :  { %v371_v53 = vmul.f32 %v753_v46, %v367_v52 }
 0x4ac   :  { %v374_v54 = vadd.f32 %v373_v51, %v372_v50 }
 0x4ad   :  { %v379_v55 = vsel %vm98_vm1, %v371_v53, 0.0 }
 0x4ae   :  { %v375_v58 = vrot.slane %v374_v54, 2  ;;  %v380_v59 = vrot.slane %v379_v55, 4 }
 0x4b0   :  { %v376_v60 = vadd.f32 %v375_v58, %v374_v54  ;;  %v381_v33 = vadd.f32 %v380_v59, %v379_v55 }
 0x4b2   :  { %v377_v3 = vrot.slane %v376_v60, 1  ;;  %v382_v7 = vrot.slane %v381_v33, 2 }
 0x4b4   :  { %v378_v35 = vadd.f32 %v377_v3, %v376_v60  ;;  %v383_v10 = vadd.f32 %v382_v7, %v381_v33  ;;  %v761_v3 = vld [vmem:[%s1201_s2 + $0x3] ss:$0 sm:$0xff] }
 0x4b6   :  { %v394_v11 = vadd.f32 %v755_v34, %v378_v35  ;;  %v384_v1 = vrot.slane %v383_v10, 1 }
 0x4b8   :  { %v756_v12 = vmul.f32 -1.442695, %v394_v11  ;;  %v385_v13 = vadd.f32 %v384_v1, %v383_v10 }
 0x4ba   :  { %795 = vpow2.f32 %v756_v12  ;;  %v395_v40 = vadd.f32 %v755_v34, %v385_v13 }
 0x4bc   :  { %v757_v14 = vmul.f32 -1.442695, %v395_v40 }
 0x4be   :  { %797 = vpow2.f32 %v757_v14 }
 0x4c4   :  { %v796_v15 = vpop.eup %795 }
 0x4c5   :  { %v402_v16 = vadd.f32 1.0, %v796_v15  ;;  %v762_v15 = vld [vmem:[%s1202_s3 + $0xc] sm:$0xf] }
 0x4c7   :  { %799 = vrcp.f32 %v402_v16 }
 0x4c8   :  { %v798_v17 = vpop.eup %797 }
 0x4c9   :  { %v403_v18 = vadd.f32 1.0, %v798_v17 }
 0x4cb   :  { %801 = vrcp.f32 %v403_v18 }
 0x4d1   :  { %v800_v19 = vpop.eup %799 }
 0x4d2   :  { %v411_v20 = vrot.slane %v800_v19, %v937_v48 }
 0x4d4   :  { %413 = vbcast.lane.b32.xlu1 %v411_v20, 256 }
 0x4d5   :  { %v802_v21 = vpop.eup %801 }
 0x4d6   :  { %v422_v22 = vrot.slane %v802_v21, %v937_v48 }
 0x4d8   :  { %424 = vbcast.lane.b32.xlu0 %v422_v22, 256  ;;  %417 = vbcast.lane.b32.xlu1 %v411_v20, 264 }
 0x4dc   :  { %428 = vbcast.lane.b32.xlu1 %v422_v22, 264 }
 0x546   :  { %v414_v23 = vpop.permute.xlu1 %413 }
 0x547   :  { %v1066_v24 = vmul.f32 %v414_v23, %v1009_v56  ;;  %v1069_v25 = vmul.f32 %v414_v23, %v1012_v57 }
 0x549   :  { %v438_v26 = vadd.f32 %v1069_v25, %v1066_v24 }
 0x54a   :  { %v418_v27 = vpop.permute.xlu1 %417  ;;  %v425_v28 = vpop.permute.xlu0 %424 }
 0x54b   :  { %v1074_v29 = vmul.f32 %v418_v27, %v1017_v61  ;;  %v1077_v30 = vmul.f32 %v418_v27, %v1020_v62  ;;  %v1080_v31 = vmul.f32 %v425_v28, %v1023_v63  ;;  %v1083_v56 = vmul.f32 %v425_v28, %v1026_v32  ;;  %439 = vadd.xlane.f32.xlu0 %v438_v26 }
 0x54d   :  { %v441_v57 = vadd.f32 %v1077_v30, %v1074_v29  ;;  %v444_v36 = vadd.f32 %v1083_v56, %v1080_v31 }
 0x54e   :  { %v429_v37 = vpop.permute.xlu1 %428 }
 0x54f   :  { %v1090_v61 = vmul.f32 %v429_v37, %v1033_v38  ;;  %v1093_v62 = vmul.f32 %v429_v37, %v1036_v39  ;;  %442 = vadd.xlane.f32.xlu1 %v441_v57  ;;  %445 = vadd.xlane.f32.xlu0 %v444_v36  ;;  %v759_v38 = vld [vmem:[%s1200_s1 + $0x38] sm:$0xff] }
 0x551   :  { %v447_v63 = vadd.f32 %v1093_v62, %v1090_v61 }
 0x553   :  { %448 = vadd.xlane.f32.xlu0 %v447_v63  ;;  %v764_v63 = vld [vmem:[%s1203_s4 + $0x3] ss:$0 sm:$0xff] }
 0x5d8   :  { %v440_v32 = vpop.xlane.xlu0 %439 }
 0x5d9   :  { %v450_v2 = vmul.f32 0.00390625, %v440_v32 }
 0x5db   :  { %v457_v39 = vmul.f32 %v758_v0, %v450_v2 }
 0x5dc   :  { %v443_v4 = vpop.xlane.xlu1 %442  ;;  %v446_v8 = vpop.xlane.xlu0 %445 }
 0x5dd   :  { %v451_v9 = vmul.f32 0.00390625, %v443_v4  ;;  %v452_v41 = vmul.f32 0.00390625, %v446_v8  ;;  %v461_v43 = vsel %vm51_vm0, %v457_v39, 0.0 }
 0x5df   :  { %v458_v42 = vmul.f32 %v759_v38, %v451_v9  ;;  %v459_v6 = vmul.f32 %v758_v0, %v452_v41 }
 0x5e0   :  { %v449_v5 = vpop.xlane.xlu0 %448 }
 0x5e1   :  { %v462_v44 = vsel %vm51_vm0, %v458_v42, 0.0  ;;  %v453_v45 = vmul.f32 0.00390625, %v449_v5  ;;  %v470_v50 = vsel %vm51_vm0, %v459_v6, 0.0 }
 0x5e2   :  { %v463_v46 = vadd.f32 %v462_v44, %v461_v43 }
 0x5e3   :  { %v460_v47 = vmul.f32 %v759_v38, %v453_v45 }
 0x5e4   :  { %v464_v49 = vrot.slane %v463_v46, 4 }
 0x5e5   :  { %v471_v51 = vsel %vm51_vm0, %v460_v47, 0.0 }
 0x5e6   :  { %v465_v52 = vadd.f32 %v464_v49, %v463_v46  ;;  %v472_v53 = vadd.f32 %v471_v51, %v470_v50 }
 0x5e8   :  { %v466_v54 = vrot.slane %v465_v52, 2  ;;  %v473_v55 = vrot.slane %v472_v53, 4 }
 0x5ea   :  { %v474_v58 = vadd.f32 %v473_v55, %v472_v53  ;;  %v467_v59 = vadd.f32 %v466_v54, %v465_v52 }
 0x5ec   :  { %v475_v60 = vrot.slane %v474_v58, 2  ;;  %v468_v33 = vrot.slane %v467_v59, 1 }
 0x5ee   :  { %v469_v7 = vadd.f32 %v468_v33, %v467_v59  ;;  %v476_v34 = vadd.f32 %v475_v60, %v474_v58 }
 0x5f0   :  { %v487_v35 = vadd.f32 %v761_v3, %v469_v7  ;;  %v477_v10 = vrot.slane %v476_v34, 1 }
 0x5f2   :  { %v489_v11 = vmax.f32 %v487_v35, 0.0  ;;  %v478_v1 = vadd.f32 %v477_v10, %v476_v34 }
 0x5f4   :  { %v494_v12 = vrot.slane %v489_v11, %v937_v48  ;;  %v488_v13 = vadd.f32 %v761_v3, %v478_v1  ;;  %v767_v3 = vld [vmem:[%s1200_s1 + $0x40] sm:$0xff] }
 0x5f6   :  { %496 = vbcast.lane.b32.xlu0 %v494_v12, 256  ;;  %v490_v40 = vmax.f32 %v488_v13, 0.0 }
 0x5f8   :  { %v501_v14 = vrot.slane %v490_v40, %v937_v48 }
 0x5fa   :  { %503 = vbcast.lane.b32.xlu1 %v501_v14, 256 }
 0x668   :  { %v497_v16 = vpop.permute.xlu0 %496 }
 0x669   :  { %v507_v17 = vmul.f32 %v762_v15, %v497_v16 }
 0x66b   :  { %v509_v18 = vsel %vm98_vm1, %v507_v17, 0.0 }
 0x66c   :  { %v510_v19 = vrot.slane %v509_v18, 4  ;;  %v504_v20 = vpop.permute.xlu1 %503 }
 0x66d   :  { %v508_v21 = vmul.f32 %v762_v15, %v504_v20 }
 0x66e   :  { %v511_v22 = vadd.f32 %v510_v19, %v509_v18 }
 0x66f   :  { %v516_v23 = vsel %vm98_vm1, %v508_v21, 0.0 }
 0x670   :  { %v512_v26 = vrot.slane %v511_v22, 2  ;;  %v517_v27 = vrot.slane %v516_v23, 4 }
 0x672   :  { %v513_v28 = vadd.f32 %v512_v26, %v511_v22  ;;  %v518_v57 = vadd.f32 %v517_v27, %v516_v23 }
 0x674   :  { %v514_v36 = vrot.slane %v513_v28, 1  ;;  %v519_v37 = vrot.slane %v518_v57, 2 }
 0x676   :  { %v515_v32 = vadd.f32 %v514_v36, %v513_v28  ;;  %v520_v2 = vadd.f32 %v519_v37, %v518_v57  ;;  %v770_v36 = vld [vmem:[%s1201_s2 + $0x4] ss:$0 sm:$0xff] }
 0x678   :  { %v531_v0 = vadd.f32 %v764_v63, %v515_v32  ;;  %v521_v38 = vrot.slane %v520_v2, 1 }
 0x67a   :  { %v765_v4 = vmul.f32 -1.442695, %v531_v0  ;;  %v522_v8 = vadd.f32 %v521_v38, %v520_v2 }
 0x67c   :  { %803 = vpow2.f32 %v765_v4  ;;  %v532_v39 = vadd.f32 %v764_v63, %v522_v8 }
 0x67e   :  { %v766_v9 = vmul.f32 -1.442695, %v532_v39 }
 0x680   :  { %805 = vpow2.f32 %v766_v9 }
 0x686   :  { %v804_v41 = vpop.eup %803 }
 0x687   :  { %v539_v42 = vadd.f32 1.0, %v804_v41  ;;  %v771_v41 = vld [vmem:[%s1202_s3 + $0x10] sm:$0xf]  ;;  %s843_s3 = smov [#allocation2]  }
 0x689   :  { %807 = vrcp.f32 %v539_v42 }
 0x68a   :  { %v806_v5 = vpop.eup %805 }
 0x68b   :  { %v540_v43 = vadd.f32 1.0, %v806_v5 }
 0x68d   :  { %809 = vrcp.f32 %v540_v43 }
 0x693   :  { %v808_v44 = vpop.eup %807 }
 0x694   :  { %v548_v6 = vrot.slane %v808_v44, %v937_v48 }
 0x696   :  { %550 = vbcast.lane.b32.xlu1 %v548_v6, 256 }
 0x697   :  { %v810_v45 = vpop.eup %809 }
 0x698   :  { %v559_v46 = vrot.slane %v810_v45, %v937_v48 }
 0x69a   :  { %561 = vbcast.lane.b32.xlu0 %v559_v46, 256  ;;  %554 = vbcast.lane.b32.xlu1 %v548_v6, 264 }
 0x69e   :  { %565 = vbcast.lane.b32.xlu1 %v559_v46, 264 }
 0x708   :  { %v551_v47 = vpop.permute.xlu1 %550 }
 0x709   :  { %v1123_v49 = vmul.f32 %v551_v47, %v1066_v24  ;;  %v1126_v50 = vmul.f32 %v551_v47, %v1069_v25 }
 0x70b   :  { %v575_v51 = vadd.f32 %v1126_v50, %v1123_v49 }
 0x70c   :  { %v555_v52 = vpop.permute.xlu1 %554  ;;  %v562_v53 = vpop.permute.xlu0 %561 }
 0x70d   :  { %v1131_v54 = vmul.f32 %v555_v52, %v1074_v29  ;;  %v1134_v55 = vmul.f32 %v555_v52, %v1077_v30  ;;  %v1137_v58 = vmul.f32 %v562_v53, %v1080_v31  ;;  %v1140_v24 = vmul.f32 %v562_v53, %v1083_v56  ;;  %576 = vadd.xlane.f32.xlu0 %v575_v51 }
 0x70f   :  { %v578_v25 = vadd.f32 %v1134_v55, %v1131_v54  ;;  %v581_v59 = vadd.f32 %v1140_v24, %v1137_v58 }
 0x710   :  { %v566_v60 = vpop.permute.xlu1 %565 }
 0x711   :  { %v1147_v29 = vmul.f32 %v566_v60, %v1090_v61  ;;  %v1150_v30 = vmul.f32 %v566_v60, %v1093_v62  ;;  %579 = vadd.xlane.f32.xlu1 %v578_v25  ;;  %582 = vadd.xlane.f32.xlu0 %v581_v59  ;;  %v768_v61 = vld [vmem:[%s1200_s1 + $0x48] sm:$0xff] }
 0x713   :  { %v584_v31 = vadd.f32 %v1150_v30, %v1147_v29 }
 0x715   :  { %585 = vadd.xlane.f32.xlu0 %v584_v31  ;;  %v773_v31 = vld [vmem:[%s1203_s4 + $0x4] ss:$0 sm:$0xff]  ;;  %s725_s4 = sshll.u32 %s843_s3, 4  ;;  %s726_s4 = int_to_ptr.vmem [resolvable:$true] %s725_s4 }
 0x716   :  { %s819_s30 = scalar_lea.vmem %s726_s4, 1024  ;;  %p824_p1 = scmp.lt.s32.totalorder %s726_s4, %s726_s4 }
 0x717   :  { %p820_p0 = scmp.ne.s32.totalorder %s726_s4, %s819_s30  ;;  %p825_p2 = scmp.lt.s32.totalorder %s819_s30, %s819_s30 }
 0x719   :  { %p826_p3 = por %p825_p2, %p824_p1 }
 0x71b   :  { %p827_p4 = pnand %p826_p3, %p820_p0 }
 0x79a   :  { %v577_v56 = vpop.xlane.xlu0 %576 }
 0x79b   :  { %v587_v33 = vmul.f32 0.00390625, %v577_v56 }
 0x79d   :  { %v594_v62 = vmul.f32 %v767_v3, %v587_v33 }
 0x79e   :  { %v580_v7 = vpop.xlane.xlu1 %579  ;;  %v583_v34 = vpop.xlane.xlu0 %582 }
 0x79f   :  { %v588_v35 = vmul.f32 0.00390625, %v580_v7  ;;  %v589_v10 = vmul.f32 0.00390625, %v583_v34  ;;  %v598_v12 = vsel %vm51_vm0, %v594_v62, 0.0 }
 0x7a1   :  { %v595_v11 = vmul.f32 %v768_v61, %v588_v35  ;;  %v596_v40 = vmul.f32 %v767_v3, %v589_v10 }
 0x7a2   :  { %v586_v1 = vpop.xlane.xlu0 %585 }
 0x7a3   :  { %v599_v13 = vsel %vm51_vm0, %v595_v11, 0.0  ;;  %v590_v14 = vmul.f32 0.00390625, %v586_v1  ;;  %v607_v18 = vsel %vm51_vm0, %v596_v40, 0.0 }
 0x7a4   :  { %v600_v15 = vadd.f32 %v599_v13, %v598_v12 }
 0x7a5   :  { %v597_v16 = vmul.f32 %v768_v61, %v590_v14 }
 0x7a6   :  { %v601_v17 = vrot.slane %v600_v15, 4 }
 0x7a7   :  { %v608_v19 = vsel %vm51_vm0, %v597_v16, 0.0 }
 0x7a8   :  { %v602_v20 = vadd.f32 %v601_v17, %v600_v15  ;;  %v609_v21 = vadd.f32 %v608_v19, %v607_v18 }
 0x7aa   :  { %v603_v22 = vrot.slane %v602_v20, 2  ;;  %v610_v23 = vrot.slane %v609_v21, 4 }
 0x7ac   :  { %v611_v26 = vadd.f32 %v610_v23, %v609_v21  ;;  %v604_v27 = vadd.f32 %v603_v22, %v602_v20 }
 0x7ae   :  { %v612_v28 = vrot.slane %v611_v26, 2  ;;  %v605_v57 = vrot.slane %v604_v27, 1 }
 0x7b0   :  { %v606_v37 = vadd.f32 %v605_v57, %v604_v27  ;;  %v613_v63 = vadd.f32 %v612_v28, %v611_v26 }
 0x7b2   :  { %v624_v32 = vadd.f32 %v770_v36, %v606_v37  ;;  %v614_v2 = vrot.slane %v613_v63, 1 }
 0x7b4   :  { %v626_v0 = vmax.f32 %v624_v32, 0.0  ;;  %v615_v38 = vadd.f32 %v614_v2, %v613_v63 }
 0x7b6   :  { %v631_v4 = vrot.slane %v626_v0, %v937_v48  ;;  %v625_v8 = vadd.f32 %v770_v36, %v615_v38 }
 0x7b8   :  { %633 = vbcast.lane.b32.xlu0 %v631_v4, 256  ;;  %v627_v39 = vmax.f32 %v625_v8, 0.0 }
 0x7ba   :  { %v638_v9 = vrot.slane %v627_v39, %v937_v48 }
 0x7bc   :  { %640 = vbcast.lane.b32.xlu1 %v638_v9, 256 }
 0x82a   :  { %v634_v42 = vpop.permute.xlu0 %633 }
 0x82b   :  { %v644_v5 = vmul.f32 %v771_v41, %v634_v42 }
 0x82d   :  { %v646_v43 = vsel %vm98_vm1, %v644_v5, 0.0 }
 0x82e   :  { %v647_v44 = vrot.slane %v646_v43, 4  ;;  %v641_v6 = vpop.permute.xlu1 %640 }
 0x82f   :  { %v645_v45 = vmul.f32 %v771_v41, %v641_v6 }
 0x830   :  { %v648_v46 = vadd.f32 %v647_v44, %v646_v43 }
 0x831   :  { %v653_v47 = vsel %vm98_vm1, %v645_v45, 0.0 }
 0x832   :  { %v649_v51 = vrot.slane %v648_v46, 2  ;;  %v654_v52 = vrot.slane %v653_v47, 4 }
 0x834   :  { %v650_v53 = vadd.f32 %v649_v51, %v648_v46  ;;  %v655_v25 = vadd.f32 %v654_v52, %v653_v47 }
 0x836   :  { %v651_v59 = vrot.slane %v650_v53, 1  ;;  %v656_v60 = vrot.slane %v655_v25, 2 }
 0x838   :  { %v652_v56 = vadd.f32 %v651_v59, %v650_v53  ;;  %v657_v33 = vadd.f32 %v656_v60, %v655_v25 }
 0x83a   :  { %v668_v3 = vadd.f32 %v773_v31, %v652_v56  ;;  %v658_v61 = vrot.slane %v657_v33, 1 }
 0x83c   :  { %v774_v7 = vmul.f32 -1.442695, %v668_v3  ;;  %v659_v34 = vadd.f32 %v658_v61, %v657_v33 }
 0x83e   :  { %811 = vpow2.f32 %v774_v7  ;;  %v669_v62 = vadd.f32 %v773_v31, %v659_v34 }
 0x840   :  { %v775_v35 = vmul.f32 -1.442695, %v669_v62 }
 0x842   :  { %813 = vpow2.f32 %v775_v35 }
 0x848   :  { %v812_v10 = vpop.eup %811 }
 0x849   :  { %v676_v11 = vadd.f32 1.0, %v812_v10 }
 0x84b   :  { %815 = vrcp.f32 %v676_v11 }
 0x84c   :  { %v814_v1 = vpop.eup %813 }
 0x84d   :  { %v677_v12 = vadd.f32 1.0, %v814_v1 }
 0x84f   :  { %817 = vrcp.f32 %v677_v12 }
 0x855   :  { %v816_v13 = vpop.eup %815 }
 0x856   :  { %v685_v40 = vrot.slane %v816_v13, %v937_v48 }
 0x858   :  { %687 = vbcast.lane.b32.xlu1 %v685_v40, 256 }
 0x859   :  { %v818_v14 = vpop.eup %817 }
 0x85a   :  { %v696_v15 = vrot.slane %v818_v14, %v937_v48 }
 0x85c   :  { %698 = vbcast.lane.b32.xlu0 %v696_v15, 256  ;;  %691 = vbcast.lane.b32.xlu1 %v685_v40, 264 }
 0x860   :  { %702 = vbcast.lane.b32.xlu1 %v696_v15, 264 }
 0x8ca   :  { %v688_v16 = vpop.permute.xlu1 %687 }
 0x8cb   :  { %v704_v17 = vmul.f32 %v688_v16, %v1123_v49  ;;  %v705_v18 = vmul.f32 %v688_v16, %v1126_v50 }
 0x8cd   :  { %712 = vst [vmem:[#allocation2] sm:$0xff] %v704_v17  ;;  %713 = vst [vmem:[#allocation2 + $0x8] sm:$0xff] %v705_v18 }
 0x8ce   :  { %v692_v19 = vpop.permute.xlu1 %691  ;;  %v699_v20 = vpop.permute.xlu0 %698 }
 0x8cf   :  { %v706_v21 = vmul.f32 %v692_v19, %v1131_v54  ;;  %v707_v22 = vmul.f32 %v692_v19, %v1134_v55  ;;  %v708_v23 = vmul.f32 %v699_v20, %v1137_v58  ;;  %v709_v48 = vmul.f32 %v699_v20, %v1140_v24 }
 0x8d1   :  { %714 = vst [vmem:[#allocation2 + $0x10] sm:$0xff] %v706_v21  ;;  %715 = vst [vmem:[#allocation2 + $0x18] sm:$0xff] %v707_v22 }
 0x8d2   :  { %716 = vst [vmem:[#allocation2 + $0x20] sm:$0xff] %v708_v23  ;;  %717 = vst [vmem:[#allocation2 + $0x28] sm:$0xff] %v709_v48  ;;  %v703_v49 = vpop.permute.xlu1 %702 }
 0x8d3   :  { %v710_v50 = vmul.f32 %v703_v49, %v1147_v29  ;;  %v711_v26 = vmul.f32 %v703_v49, %v1150_v30 }
 0x8d5   :  { %718 = vst [vmem:[#allocation2 + $0x30] sm:$0xff] %v710_v50  ;;  %719 = vst [vmem:[#allocation2 + $0x38] sm:$0xff] %v711_v26 }
 0x8d6   :  { %830 = shalt.err (!%p827_p4)
}
 0x8d7   :  { %s831_s8 = scalar_lea.hbm %s1204_s5, 1024 }
 0x8d8   :  { %p832_p5 = scmp.ne.s32.totalorder %s1204_s5, %s831_s8  ;;  %p835_p6 = scmp.lt.u32.totalorder %s831_s8, %s1204_s5 }
 0x8da   :  { %p837_p7 = pnand %p835_p6, %p832_p5 }
 0x8dc   :  { %840 = shalt.err (!%p837_p7)
}
 0x8dd   :  { %s844_s12 = smov 256   ;;  %s845_s13 = smov 16  }
 0x8de   :  { %731 = dma.vmem_to_hbm [thread:$0]  %s726_s4, 1024, %s1204_s5, [#allocation3], %s844_s12, %s844_s12, %s845_s13  }
 0x8df   :  { %841 = dma.done.wait [#allocation3], 1024  }
 0x8e0   :  { %842 = vsyncadd [#allocation3], 4294966272 }
 0x8e1   :  { %735 = vsyncpa [#allocation3], 1 }

</bundles_post_ra>
